<compile_context>
chip_gen: v6e
topology: v6e:2x2x1
jax: 0.10.0
libtpu: 0.0.40
codegen_flags: <defaults>
</compile_context>

<pallas_src>
import functools

import jax
import jax.numpy as jnp
from jax.experimental import pallas as pl
from jax.experimental.pallas import tpu as pltpu


def _round_up(n, m):
    return ((n + m - 1) // m) * m


def _softplus(x):
    # numerically-stable softplus; exp/log1p go to the EUP
    return jnp.maximum(x, 0.0) + jnp.log1p(jnp.exp(-jnp.abs(x)))


def _choose_tb(b, fp, cp, budget_bytes=16 << 20):
    """Largest batch tile (multiple of 8, <=512) whose double-buffered working
    set plus the resident weights fits a conservative VMEM budget (sized for
    v7x's smaller VMEM; generous on v5e/v6e)."""
    resident = 4 * (fp * fp + fp * cp + fp + cp)       # Ws^T + Wc^T + biases (f32 upper bound)
    per_row = 4 * (2 * fp + cp)                        # x + phi + logits, f32
    tb = min(512, _round_up(b, 8))
    while tb > 8 and resident + 2 * tb * per_row > budget_bytes:
        tb = max(8, _round_up(tb // 2, 8))
    return tb


def _switchnet_kernel(x_ref, ws_ref, bs_ref, wc_ref, bc_ref,
                      logits_ref, phi_ref, *, f_true, f_pad):
    x = x_ref[...].astype(jnp.float32)                           # [TB, Fp]

    # selector linear (weights pre-transposed to [F_in, F_out]) + softplus
    sel = jnp.dot(x.astype(ws_ref.dtype), ws_ref[...],
                  preferred_element_type=jnp.float32) + bs_ref[...]
    phi = _softplus(sel)                                         # [TB, Fp] f32

    # zero the padded feature columns so the row sum and the classifier
    # contraction only see the true F features
    if f_pad > f_true:
        col = jax.lax.broadcasted_iota(jnp.int32, phi.shape, 1)
        phi = jnp.where(col < f_true, phi, 0.0)

    phi_ref[...] = phi.astype(phi_ref.dtype)

    # feature re-weighting: one reciprocal per row, then two multiplies
    phi_sum = jnp.sum(phi, axis=1, keepdims=True)                # [TB, 1]
    inv = pl.reciprocal(phi_sum, approx=False)                   # exact; approx=True -> EUP
    x_select = (x * phi) * inv                                   # [TB, Fp]

    # classifier linear (weights pre-transposed to [Fp, Cp])
    logits = jnp.dot(x_select.astype(wc_ref.dtype), wc_ref[...],
                     preferred_element_type=jnp.float32) + bc_ref[...]
    logits_ref[...] = logits.astype(logits_ref.dtype)


def switchnet_forward(x, ws, bs, wc, bc, *, matmul_dtype=jnp.float32):
    """Point-estimate SwitchNet forward.

    x: [B, F] f32; ws: [F, F] (torch [out, in]); bs: [F]; wc: [C, F]; bc: [C].
    Returns (logits [B, C] f32, phi [B, F] f32).
    """
    B, F = x.shape
    C = wc.shape[0]

    # lane-pad feature / class dims to full 128-lane tiles
    Fp = max(128, _round_up(F, 128))
    Cp = max(128, _round_up(C, 128))

    TB = _choose_tb(B, Fp, Cp)
    Bp = _round_up(max(B, TB), TB)

    # pad + pre-transpose the weights once (torch [out, in] -> [in, out]);
    # x / phi stay f32 so the softplus + rescale math keeps full precision
    x_p = jnp.zeros((Bp, Fp), jnp.float32).at[:B, :F].set(x.astype(jnp.float32))
    ws_t = jnp.zeros((Fp, Fp), matmul_dtype).at[:F, :F].set(ws.T.astype(matmul_dtype))
    wc_t = jnp.zeros((Fp, Cp), matmul_dtype).at[:F, :C].set(wc.T.astype(matmul_dtype))
    bs_p = jnp.zeros((1, Fp), jnp.float32).at[0, :F].set(bs.astype(jnp.float32))
    bc_p = jnp.zeros((1, Cp), jnp.float32).at[0, :C].set(bc.astype(jnp.float32))

    wbytes = 2 if matmul_dtype == jnp.bfloat16 else 4
    cost = pl.CostEstimate(
        flops=2 * Bp * Fp * Fp + 2 * Bp * Fp * Cp,
        transcendentals=2 * Bp * Fp,
        bytes_accessed=(4 * Bp * Fp                 # x in
                        + wbytes * (Fp * Fp + Fp * Cp)   # weights
                        + 4 * Bp * Fp               # phi out
                        + 4 * Bp * Cp),             # logits out
    )

    kernel = functools.partial(_switchnet_kernel, f_true=F, f_pad=Fp)

    logits_p, phi_p = pl.pallas_call(
        kernel,
        out_shape=(
            jax.ShapeDtypeStruct((Bp, Cp), jnp.float32),
            jax.ShapeDtypeStruct((Bp, Fp), jnp.float32),
        ),
        grid=(Bp // TB,),
        in_specs=[
            pl.BlockSpec((TB, Fp), lambda i: (i, 0)),   # x tile (pipelined)
            pl.BlockSpec((Fp, Fp), lambda i: (0, 0)),   # Ws^T  (resident)
            pl.BlockSpec((1, Fp), lambda i: (0, 0)),    # bs    (resident)
            pl.BlockSpec((Fp, Cp), lambda i: (0, 0)),   # Wc^T  (resident)
            pl.BlockSpec((1, Cp), lambda i: (0, 0)),    # bc    (resident)
        ],
        out_specs=(
            pl.BlockSpec((TB, Cp), lambda i: (i, 0)),   # logits tile (lane-dense)
            pl.BlockSpec((TB, Fp), lambda i: (i, 0)),   # phi tile   (lane-dense)
        ),
        compiler_params=pltpu.CompilerParams(
            dimension_semantics=("parallel",),          # shard batch over v7x's 2 TCs
            vmem_limit_bytes=32 * 1024 * 1024,
        ),
        cost_estimate=cost,
    )(x_p, ws_t, bs_p, wc_t, bc_p)

    return logits_p[:B, :C], phi_p[:B, :F]


def reference_forward(x, ws, bs, wc, bc):
    sel = x @ ws.T + bs
    phi = jax.nn.softplus(sel)
    phi_sum = jnp.sum(phi, axis=1, keepdims=True)
    x_select = x * (phi / phi_sum)
    logits = x_select @ wc.T + bc
    return logits, phi


if __name__ == "__main__":
    B, F, C = 8, 32, 16   # small shapes consistent with a [B, F] feature input

    key = jax.random.PRNGKey(0)
    kx, kws, kbs, kwc, kbc = jax.random.split(key, 5)

    x = jax.random.normal(kx, (B, F), dtype=jnp.float32)
    ws = jax.random.normal(kws, (F, F), dtype=jnp.float32) * 0.1  # selector  [out, in]
    bs = jax.random.normal(kbs, (F,), dtype=jnp.float32) * 0.1
    wc = jax.random.normal(kwc, (C, F), dtype=jnp.float32) * 0.1  # classifier [out, in]
    bc = jax.random.normal(kbc, (C,), dtype=jnp.float32) * 0.1

    logits, phi = switchnet_forward(x, ws, bs, wc, bc)
    jax.block_until_ready((logits, phi))

    ref_logits, ref_phi = reference_forward(x, ws, bs, wc, bc)
    assert logits.shape == (B, C) and phi.shape == (B, F)
    assert jnp.allclose(logits, ref_logits, atol=1e-4, rtol=1e-4)
    assert jnp.allclose(phi, ref_phi, atol=1e-4, rtol=1e-4)

    print("KERNEL_OK")
</pallas_src>

<mosaic_0001>
module attributes {stable_mosaic.version = 11 : i64} {
  func.func @_switchnet_kernel(%arg0: i32, %arg1: memref<8x128xf32, #tpu.memory_space<vmem>>, %arg2: memref<128x128xf32, #tpu.memory_space<vmem>>, %arg3: memref<1x128xf32, #tpu.memory_space<vmem>>, %arg4: memref<128x128xf32, #tpu.memory_space<vmem>>, %arg5: memref<1x128xf32, #tpu.memory_space<vmem>>, %arg6: memref<8x128xf32, #tpu.memory_space<vmem>>, %arg7: memref<8x128xf32, #tpu.memory_space<vmem>>) attributes {dimension_semantics = [#tpu.dimension_semantics<parallel>], iteration_bounds = array<i64: 1>, scalar_prefetch = 0 : i64, scratch_operands = 0 : i64, tpu.core_type = #tpu.core_type<tc>, window_params = [{transform_indices = @transform_0, window_bounds = array<i64: 8, 128>}, {pipeline_mode = #tpu.pipeline_mode<synchronous>, transform_indices = @transform_1, window_bounds = array<i64: 128, 128>}, {pipeline_mode = #tpu.pipeline_mode<synchronous>, transform_indices = @transform_2, window_bounds = array<i64: 1, 128>}, {pipeline_mode = #tpu.pipeline_mode<synchronous>, transform_indices = @transform_3, window_bounds = array<i64: 128, 128>}, {pipeline_mode = #tpu.pipeline_mode<synchronous>, transform_indices = @transform_4, window_bounds = array<i64: 1, 128>}, {transform_indices = @transform_5, window_bounds = array<i64: 8, 128>}, {transform_indices = @transform_6, window_bounds = array<i64: 8, 128>}]} {
    %c0 = arith.constant 0 : index
    %c0_0 = arith.constant 0 : index
    %0 = vector.load %arg1[%c0, %c0_0] : memref<8x128xf32, #tpu.memory_space<vmem>>, vector<8x128xf32>
    %c0_1 = arith.constant 0 : index
    %c0_2 = arith.constant 0 : index
    %1 = vector.load %arg2[%c0_1, %c0_2] : memref<128x128xf32, #tpu.memory_space<vmem>>, vector<128x128xf32>
    %cst = arith.constant dense<0.000000e+00> : vector<8x128xf32>
    %2 = tpu.matmul %0, %1, %cst {dimension_numbers = #tpu.dot_dimension_numbers<[1], [0], [0], [1], [0, 0, 1, 1], [], []>} : vector<8x128xf32>, vector<128x128xf32>, vector<8x128xf32> -> vector<8x128xf32>
    %c0_3 = arith.constant 0 : index
    %c0_4 = arith.constant 0 : index
    %3 = vector.load %arg3[%c0_3, %c0_4] : memref<1x128xf32, #tpu.memory_space<vmem>>, vector<1x128xf32>
    %4 = vector.broadcast %3 : vector<1x128xf32> to vector<8x128xf32>
    %5 = arith.addf %2, %4 : vector<8x128xf32>
    %cst_5 = arith.constant 0.000000e+00 : f32
    %6 = vector.broadcast %cst_5 : f32 to vector<8x128xf32>
    %7 = arith.maximumf %5, %6 : vector<8x128xf32>
    %8 = math.absf %5 : vector<8x128xf32>
    %cst_6 = arith.constant 0.000000e+00 : f32
    %9 = vector.broadcast %cst_6 : f32 to vector<8x128xf32>
    %10 = arith.subf %9, %8 : vector<8x128xf32>
    %11 = math.exp %10 : vector<8x128xf32>
    %12 = math.log1p %11 : vector<8x128xf32>
    %13 = arith.addf %7, %12 : vector<8x128xf32>
    %14 = tpu.iota {dimensions = array<i32: 1>} : vector<8x128xi32>
    %c32_i32 = arith.constant 32 : i32
    %15 = vector.broadcast %c32_i32 : i32 to vector<8x128xi32>
    %16 = arith.cmpi slt, %14, %15 : vector<8x128xi32>
    %cst_7 = arith.constant 0.000000e+00 : f32
    %17 = vector.broadcast %cst_7 : f32 to vector<8x128xf32>
    %18 = arith.select %16, %13, %17 : vector<8x128xi1>, vector<8x128xf32>
    %c0_8 = arith.constant 0 : index
    %c0_9 = arith.constant 0 : index
    %19 = vector.load %arg7[%c0_8, %c0_9] : memref<8x128xf32, #tpu.memory_space<vmem>>, vector<8x128xf32>
    tpu.vector_store %arg7[%c0_8, %c0_9], %18 {strides = array<i32>} : memref<8x128xf32, #tpu.memory_space<vmem>>, vector<8x128xf32>,
    %cst_10 = arith.constant dense<0.000000e+00> : vector<8xf32>
    %20 = vector.multi_reduction <add>, %18, %cst_10 [1] : vector<8x128xf32> to vector<8xf32>
    %21 = vector.shape_cast %20 : vector<8xf32> to vector<8x1xf32>
    %22 = tpu.reciprocal %21 : vector<8x1xf32> -> vector<8x1xf32>
    %23 = arith.mulf %0, %18 : vector<8x128xf32>
    %24 = vector.broadcast %22 : vector<8x1xf32> to vector<8x128xf32>
    %25 = arith.mulf %23, %24 : vector<8x128xf32>
    %c0_11 = arith.constant 0 : index
    %c0_12 = arith.constant 0 : index
    %26 = vector.load %arg4[%c0_11, %c0_12] : memref<128x128xf32, #tpu.memory_space<vmem>>, vector<128x128xf32>
    %cst_13 = arith.constant dense<0.000000e+00> : vector<8x128xf32>
    %27 = tpu.matmul %25, %26, %cst_13 {dimension_numbers = #tpu.dot_dimension_numbers<[1], [0], [0], [1], [0, 0, 1, 1], [], []>} : vector<8x128xf32>, vector<128x128xf32>, vector<8x128xf32> -> vector<8x128xf32>
    %c0_14 = arith.constant 0 : index
    %c0_15 = arith.constant 0 : index
    %28 = vector.load %arg5[%c0_14, %c0_15] : memref<1x128xf32, #tpu.memory_space<vmem>>, vector<1x128xf32>
    %29 = vector.broadcast %28 : vector<1x128xf32> to vector<8x128xf32>
    %30 = arith.addf %27, %29 : vector<8x128xf32>
    %c0_16 = arith.constant 0 : index
    %c0_17 = arith.constant 0 : index
    %31 = vector.load %arg6[%c0_16, %c0_17] : memref<8x128xf32, #tpu.memory_space<vmem>>, vector<8x128xf32>
    tpu.vector_store %arg6[%c0_16, %c0_17], %30 {strides = array<i32>} : memref<8x128xf32, #tpu.memory_space<vmem>>, vector<8x128xf32>,
    return
  }
  func.func @transform_0(%arg0: i32) -> (i32, i32) {
    %c0_i32 = arith.constant 0 : i32
    %c0_i32_0 = arith.constant 0 : i32
    return %arg0, %c0_i32 : i32, i32
  }
  func.func @transform_1(%arg0: i32) -> (i32, i32) {
    %c0_i32 = arith.constant 0 : i32
    %c0_i32_0 = arith.constant 0 : i32
    %c0_i32_1 = arith.constant 0 : i32
    return %c0_i32, %c0_i32_0 : i32, i32
  }
  func.func @transform_2(%arg0: i32) -> (i32, i32) {
    %c0_i32 = arith.constant 0 : i32
    %c0_i32_0 = arith.constant 0 : i32
    %c0_i32_1 = arith.constant 0 : i32
    return %c0_i32, %c0_i32_0 : i32, i32
  }
  func.func @transform_3(%arg0: i32) -> (i32, i32) {
    %c0_i32 = arith.constant 0 : i32
    %c0_i32_0 = arith.constant 0 : i32
    %c0_i32_1 = arith.constant 0 : i32
    return %c0_i32, %c0_i32_0 : i32, i32
  }
  func.func @transform_4(%arg0: i32) -> (i32, i32) {
    %c0_i32 = arith.constant 0 : i32
    %c0_i32_0 = arith.constant 0 : i32
    %c0_i32_1 = arith.constant 0 : i32
    return %c0_i32, %c0_i32_0 : i32, i32
  }
  func.func @transform_5(%arg0: i32) -> (i32, i32) {
    %c0_i32 = arith.constant 0 : i32
    %c0_i32_0 = arith.constant 0 : i32
    return %arg0, %c0_i32 : i32, i32
  }
  func.func @transform_6(%arg0: i32) -> (i32, i32) {
    %c0_i32 = arith.constant 0 : i32
    %c0_i32_0 = arith.constant 0 : i32
    return %arg0, %c0_i32 : i32, i32
  }
}

</mosaic_0001>

<bundles_post_ra>
// kernel: tpu_custom_call.1
= control target key start
LH: loop header
LB: loop body
LE: loop exit
PB: predicated region body
PF: predicated region fallthrough
CT: control target
= control target key end

     0   :  { %12 = vsyncpa [#allocation3], 0  ;;  %s638_s0 = inlined_call_operand.hbm [shape: f32[8,128], index: 0, kind: input, shape index: {}]   ;;  %s639_s1 = inlined_call_operand.hbm [shape: f32[128,128], index: 1, kind: input, shape index: {}]   ;;  %s640_s2 = inlined_call_operand.vmem [shape: f32[1,128], index: 2, kind: input, shape index: {}]   ;;  %s641_s3 = inlined_call_operand.hbm [shape: f32[128,128], index: 3, kind: input, shape index: {}]   ;;  %s642_s4 = inlined_call_operand.vmem [shape: f32[1,128], index: 4, kind: input, shape index: {}]   ;;  %s643_s5 = inlined_call_operand.hbm [shape: f32[8,128], index: 5, kind: output, shape index: {0}]   ;;  %s644_s6 = inlined_call_operand.hbm [shape: f32[8,128], index: 6, kind: output, shape index: {1}]  }
   0x1   :  { %13 = vsyncpa [#allocation6], 0 }
   0x2   :  { %14 = vsyncpa [#allocation4], 0 }
   0x3   :  { %15 = vsyncpa [#allocation10], 0  ;;  %s535_s21 = smov [#allocation5]  }
   0x4   :  { %s31_s22 = sshll.u32 %s535_s21, 4  ;;  %s32_s22 = int_to_ptr.vmem [resolvable:$true] %s31_s22 }
   0x5   :  { %s435_s23 = scalar_lea.vmem %s32_s22, 2048  ;;  %p440_p1 = scmp.lt.s32.totalorder %s32_s22, %s32_s22 }
   0x6   :  { %p436_p0 = scmp.ne.s32.totalorder %s32_s22, %s435_s23  ;;  %p441_p2 = scmp.lt.s32.totalorder %s435_s23, %s435_s23 }
   0x8   :  { %p442_p3 = por %p441_p2, %p440_p1 }
   0xa   :  { %p443_p4 = pnand %p442_p3, %p436_p0 }
   0xc   :  { %446 = shalt.err (!%p443_p4)
}
   0xd   :  { %s536_s24 = smov 128   ;;  %s537_s25 = smov 8  }
   0xe   :  { %37 = dma.hbm_to_vmem [thread:$0]  %s639_s1, 2048, %s32_s22, [#allocation6], %s536_s24, %s536_s24, %s537_s25  }
   0xf   :  { %s538_s28 = smov [#allocation2]   ;;  %s539_s30 = smov [#allocation7]  }
  0x10   :  { %s22_s29 = sshll.u32 %s538_s28, 4  ;;  %s45_s7 = sshll.u32 %s539_s30, 4  ;;  %s23_s29 = int_to_ptr.vmem [resolvable:$true] %s22_s29  ;;  %s46_s7 = int_to_ptr.vmem [resolvable:$true] %s45_s7 }
  0x11   :  { %s455_s8 = scalar_lea.vmem %s23_s29, 128  ;;  %p460_p6 = scmp.lt.s32.totalorder %s23_s29, %s23_s29 }
  0x12   :  { %p456_p5 = scmp.ne.s32.totalorder %s23_s29, %s455_s8  ;;  %p461_p7 = scmp.lt.s32.totalorder %s455_s8, %s455_s8 }
  0x14   :  { %p462_p8 = por %p461_p7, %p460_p6 }
  0x16   :  { %p463_p9 = pnand %p462_p8, %p456_p5 }
  0x18   :  { %466 = shalt.err (!%p463_p9)
}
  0x19   :  { %25 = dma.hbm_to_vmem [thread:$0]  %s638_s0, 128, %s23_s29, [#allocation3]  }
  0x1a   :  { %s475_s11 = scalar_lea.vmem %s46_s7, 2048  ;;  %p480_p11 = scmp.lt.s32.totalorder %s46_s7, %s46_s7 }
  0x1b   :  { %p476_p10 = scmp.ne.s32.totalorder %s46_s7, %s475_s11  ;;  %p481_p12 = scmp.lt.s32.totalorder %s475_s11, %s475_s11 }
  0x1d   :  { %p482_p13 = por %p481_p12, %p480_p11 }
  0x1f   :  { %p483_p0 = pnand %p482_p13, %p476_p10 }
  0x21   :  { %486 = shalt.err (!%p483_p0)
}
  0x22   :  { %51 = dma.hbm_to_vmem [thread:$0]  %s641_s3, 2048, %s46_s7, [#allocation6], %s536_s24, %s536_s24, %s537_s25  }
  0x23   :  { %527 = dma.done.wait [#allocation3], 128  }
  0x24   :  { %528 = vsyncadd [#allocation3], 4294967168 }
  0x25   :  { %529 = dma.done.wait [#allocation6], 4096  }
  0x26   :  { %530 = vsyncadd [#allocation6], 4294963200  ;;  %v540_v0 = vmov 0.0   ;;  %vm541_vm0 = vmmov 0   ;;  %v79_v1 = vld [vmem:[#allocation5 + $0x78] sm:$0xff]  ;;  %v78_v2 = vld [vmem:[#allocation5 + $0x70] sm:$0xff]  ;;  %v172_v35 = vlaneseq }
  0x27   :  { %342 = vmatprep.subr.mxu0 %v540_v0  ;;  %374 = vmatprep.mubr.msk.f32.mxu0 %vm541_vm0, %v540_v0  ;;  %v77_v3 = vld [vmem:[#allocation5 + $0x68] sm:$0xff]  ;;  %v76_v4 = vld [vmem:[#allocation5 + $0x60] sm:$0xff]  ;;  %v75_v5 = vld [vmem:[#allocation5 + $0x58] sm:$0xff] }
  0x28   :  { %377 = vmatprep.subr.mxu1 %v540_v0  ;;  %409 = vmatprep.mubr.msk.f32.mxu1 %vm541_vm0, %v540_v0  ;;  %v74_v6 = vld [vmem:[#allocation5 + $0x50] sm:$0xff]  ;;  %v73_v7 = vld [vmem:[#allocation5 + $0x48] sm:$0xff]  ;;  %v72_v8 = vld [vmem:[#allocation5 + $0x40] sm:$0xff]  ;;  %v173_v38 = vand.u32 127, %v172_v35 }
  0x29   :  { %343 = vmatpush3.msra.mxu0 %v79_v1  ;;  %v71_v9 = vld [vmem:[#allocation5 + $0x38] sm:$0xff]  ;;  %v70_v10 = vld [vmem:[#allocation5 + $0x30] sm:$0xff]  ;;  %v69_v11 = vld [vmem:[#allocation5 + $0x28] sm:$0xff] }
  0x2a   :  { %344 = vmatprep.subr.mxu0 %v540_v0  ;;  %v68_v12 = vld [vmem:[#allocation5 + $0x20] sm:$0xff]  ;;  %v67_v13 = vld [vmem:[#allocation5 + $0x18] sm:$0xff]  ;;  %v66_v14 = vld [vmem:[#allocation5 + $0x10] sm:$0xff]  ;;  %vm174_vm2 = vcmp.lt.s32.totalorder %v173_v38, 32 }
  0x2b   :  { %345 = vmatpush3.msra.mxu0 %v78_v2  ;;  %v65_v15 = vld [vmem:[#allocation5 + $0x8] sm:$0xff]  ;;  %v64_v16 = vld [vmem:[#allocation5] sm:$0xff]  ;;  %v606_v17 = vld [vmem:[#allocation2] sm:$0xff] }
  0x2c   :  { %346 = vmatprep.subr.mxu0 %v540_v0  ;;  %v197_v18 = vld [vmem:[#allocation7 + $0x78] sm:$0xff]  ;;  %v196_v19 = vld [vmem:[#allocation7 + $0x70] sm:$0xff]  ;;  %v195_v20 = vld [vmem:[#allocation7 + $0x68] sm:$0xff] }
  0x2d   :  { %347 = vmatpush3.msra.mxu0 %v77_v3  ;;  %378 = vmatpush3.msra.mxu1 %v197_v18  ;;  %v194_v21 = vld [vmem:[#allocation7 + $0x60] sm:$0xff]  ;;  %v193_v22 = vld [vmem:[#allocation7 + $0x58] sm:$0xff]  ;;  %v192_v23 = vld [vmem:[#allocation7 + $0x50] sm:$0xff] }
  0x2e   :  { %348 = vmatprep.subr.mxu0 %v540_v0  ;;  %379 = vmatprep.subr.mxu1 %v540_v0  ;;  %v191_v24 = vld [vmem:[#allocation7 + $0x48] sm:$0xff]  ;;  %v306_v25 = vld [vmem:[%s640_s2] ss:$0 sm:$0xff]  ;;  %v190_v46 = vld [vmem:[#allocation7 + $0x40] sm:$0xff]  ;;  %s542_s2 = smov [#allocation9]  }
  0x2f   :  { %349 = vmatpush3.msra.mxu0 %v76_v4  ;;  %380 = vmatpush3.msra.mxu1 %v196_v19  ;;  %v189_v47 = vld [vmem:[#allocation7 + $0x38] sm:$0xff]  ;;  %v188_v48 = vld [vmem:[#allocation7 + $0x30] sm:$0xff]  ;;  %v187_v49 = vld [vmem:[#allocation7 + $0x28] sm:$0xff]  ;;  %s292_s13 = sshll.u32 %s542_s2, 4  ;;  %s293_s13 = int_to_ptr.vmem [resolvable:$true] %s292_s13 }
  0x30   :  { %350 = vmatprep.subr.mxu0 %v540_v0  ;;  %381 = vmatprep.subr.mxu1 %v540_v0  ;;  %v186_v50 = vld [vmem:[#allocation7 + $0x20] sm:$0xff]  ;;  %v185_v51 = vld [vmem:[#allocation7 + $0x18] sm:$0xff]  ;;  %v184_v52 = vld [vmem:[#allocation7 + $0x10] sm:$0xff]  ;;  %s487_s14 = scalar_lea.vmem %s293_s13, 128  ;;  %p492_p2 = scmp.lt.s32.totalorder %s293_s13, %s293_s13 }
  0x31   :  { %351 = vmatpush3.msra.mxu0 %v75_v5  ;;  %382 = vmatpush3.msra.mxu1 %v195_v20  ;;  %v183_v53 = vld [vmem:[#allocation7 + $0x8] sm:$0xff]  ;;  %v182_v54 = vld [vmem:[#allocation7] sm:$0xff]  ;;  %p488_p1 = scmp.ne.s32.totalorder %s293_s13, %s487_s14  ;;  %p493_p3 = scmp.lt.s32.totalorder %s487_s14, %s487_s14 }
  0x32   :  { %352 = vmatprep.subr.mxu0 %v540_v0  ;;  %383 = vmatprep.subr.mxu1 %v540_v0 }
  0x33   :  { %353 = vmatpush3.msra.mxu0 %v74_v6  ;;  %384 = vmatpush3.msra.mxu1 %v194_v21  ;;  %p494_p4 = por %p493_p3, %p492_p2 }
  0x34   :  { %354 = vmatprep.subr.mxu0 %v540_v0  ;;  %385 = vmatprep.subr.mxu1 %v540_v0 }
  0x35   :  { %355 = vmatpush3.msra.mxu0 %v73_v7  ;;  %386 = vmatpush3.msra.mxu1 %v193_v22  ;;  %p495_p5 = pnand %p494_p4, %p488_p1 }
  0x36   :  { %356 = vmatprep.subr.mxu0 %v540_v0  ;;  %387 = vmatprep.subr.mxu1 %v540_v0 }
  0x37   :  { %357 = vmatpush3.msra.mxu0 %v72_v8  ;;  %388 = vmatpush3.msra.mxu1 %v192_v23 }
  0x38   :  { %358 = vmatprep.subr.mxu0 %v540_v0  ;;  %389 = vmatprep.subr.mxu1 %v540_v0 }
  0x39   :  { %359 = vmatpush3.msra.mxu0 %v71_v9  ;;  %390 = vmatpush3.msra.mxu1 %v191_v24 }
  0x3a   :  { %360 = vmatprep.subr.mxu0 %v540_v0  ;;  %391 = vmatprep.subr.mxu1 %v540_v0 }
  0x3b   :  { %361 = vmatpush3.msra.mxu0 %v70_v10  ;;  %392 = vmatpush3.msra.mxu1 %v190_v46 }
  0x3c   :  { %362 = vmatprep.subr.mxu0 %v540_v0  ;;  %393 = vmatprep.subr.mxu1 %v540_v0 }
  0x3d   :  { %363 = vmatpush3.msra.mxu0 %v69_v11  ;;  %394 = vmatpush3.msra.mxu1 %v189_v47 }
  0x3e   :  { %364 = vmatprep.subr.mxu0 %v540_v0  ;;  %395 = vmatprep.subr.mxu1 %v540_v0 }
  0x3f   :  { %365 = vmatpush3.msra.mxu0 %v68_v12  ;;  %396 = vmatpush3.msra.mxu1 %v188_v48 }
  0x40   :  { %366 = vmatprep.subr.mxu0 %v540_v0  ;;  %397 = vmatprep.subr.mxu1 %v540_v0 }
  0x41   :  { %367 = vmatpush3.msra.mxu0 %v67_v13  ;;  %398 = vmatpush3.msra.mxu1 %v187_v49 }
  0x42   :  { %368 = vmatprep.subr.mxu0 %v540_v0  ;;  %399 = vmatprep.subr.mxu1 %v540_v0 }
  0x43   :  { %369 = vmatpush3.msra.mxu0 %v66_v14  ;;  %400 = vmatpush3.msra.mxu1 %v186_v50 }
  0x44   :  { %370 = vmatprep.subr.mxu0 %v540_v0  ;;  %401 = vmatprep.subr.mxu1 %v540_v0 }
  0x45   :  { %371 = vmatpush3.msra.mxu0 %v65_v15  ;;  %402 = vmatpush3.msra.mxu1 %v185_v51 }
  0x46   :  { %372 = vmatprep.subr.mxu0 %v540_v0  ;;  %403 = vmatprep.subr.mxu1 %v540_v0 }
  0x47   :  { %373 = vmatpush3.msra.mxu0 %v64_v16  ;;  %404 = vmatpush3.msra.mxu1 %v184_v52 }
  0x48   :  { %375 = vmatmul.mubr.f32.vlgmr.msra.gmra.mxu0 %v606_v17  ;;  %405 = vmatprep.subr.mxu1 %v540_v0 }
  0x49   :  { %406 = vmatpush3.msra.mxu1 %v183_v53 }
  0x4a   :  { %407 = vmatprep.subr.mxu1 %v540_v0 }
  0x4b   :  { %408 = vmatpush3.msra.mxu1 %v182_v54 }
 0x108   :  { %v153_v26 = vpop.f32.mrf.mxu0 }
 0x109   :  { %v154_v27 = vadd.f32 %v306_v25, %v153_v26 }
 0x10a   :  { %v376_v28 = vpop.f32.mrf.mxu0 }
 0x10b   :  { %v158_v29 = vand.u32 2147483647, %v154_v27  ;;  %v157_v42 = vmax.f32 %v154_v27, 0.0 }
 0x10d   :  { %v159_v30 = vsub.f32 0.0, %v158_v29 }
 0x10f   :  { %v160_v31 = vmul.f32 1.442695, %v159_v30 }
 0x111   :  { %421 = vpow2.f32 %v160_v31 }
 0x11e   :  { %v422_v32 = vpop.eup %421 }
 0x11f   :  { %v162_v33 = vadd.f32 1.0, %v422_v32  ;;  %v165_v34 = vmul.f32 -0.5, %v422_v32  ;;  %v168_v37 = vand.u32 2147483647, %v422_v32 }
 0x121   :  { %423 = vlog2.f32 %v162_v33  ;;  %v166_v36 = vadd.f32 1.0, %v165_v34  ;;  %vm169_vm1 = vcmp.lt.f32.partialorder %v168_v37, 0.0004427343 }
 0x123   :  { %v167_v41 = vmul.f32 %v422_v32, %v166_v36 }
 0x12e   :  { %v424_v39 = vpop.eup %423 }
 0x12f   :  { %v164_v40 = vmul.f32 0.6931472, %v424_v39 }
 0x131   :  { %v170_v43 = vsel %vm169_vm1, %v167_v41, %v164_v40 }
 0x132   :  { %v171_v44 = vadd.f32 %v170_v43, %v157_v42 }
 0x134   :  { %v175_v45 = vsel %vm174_vm2, %v171_v44, 0.0 }
 0x135   :  { %177 = vadd.xlane.f32.xlu0 %v175_v45  ;;  %176 = vst [vmem:[#allocation9] sm:$0xff] %v175_v45  ;;  %v180_v56 = vmul.f32 %v175_v45, %v606_v17 }
 0x1be   :  { %v178_v55 = vpop.xlane.xlu0 %177 }
 0x1bf   :  { %425 = vrcp.f32 %v178_v55 }
 0x1cc   :  { %v426_v57 = vpop.eup %425 }
 0x1cd   :  { %v181_v58 = vmul.f32 %v426_v57, %v180_v56 }
 0x1cf   :  { %410 = vmatmul.mubr.f32.vlgmr.msra.gmra.mxu1 %v181_v58 }
 0x1d0   :  { %498 = shalt.err (!%p495_p5)
}
 0x1d1   :  { %295 = dma.vmem_to_hbm [thread:$0]  %s293_s13, 128, %s644_s6, [#allocation10]   ;;  %v307_v59 = vld [vmem:[%s642_s4] ss:$0 sm:$0xff] }
 0x1d2   :  { %s543_s19 = smov [#allocation8]  }
 0x1d3   :  { %s282_s20 = sshll.u32 %s543_s19, 4  ;;  %s283_s20 = int_to_ptr.vmem [resolvable:$true] %s282_s20 }
 0x1d4   :  { %s507_s21 = scalar_lea.vmem %s283_s20, 128  ;;  %p512_p7 = scmp.lt.s32.totalorder %s283_s20, %s283_s20 }
 0x1d5   :  { %p508_p6 = scmp.ne.s32.totalorder %s283_s20, %s507_s21  ;;  %p513_p8 = scmp.lt.s32.totalorder %s507_s21, %s507_s21 }
 0x1d7   :  { %p514_p9 = por %p513_p8, %p512_p7 }
 0x1d9   :  { %p515_p10 = pnand %p514_p9, %p508_p6 }
 0x28f   :  { %v271_v60 = vpop.f32.mrf.mxu1 }
 0x290   :  { %v272_v61 = vadd.f32 %v307_v59, %v271_v60 }
 0x291   :  { %v411_v62 = vpop.f32.mrf.mxu1 }
 0x292   :  { %275 = vst [vmem:[#allocation8] sm:$0xff] %v272_v61 }
 0x293   :  { %518 = shalt.err (!%p515_p10)
}
 0x294   :  { %285 = dma.vmem_to_hbm [thread:$0]  %s283_s20, 128, %s643_s5, [#allocation4]  }
 0x295   :  { %531 = dma.done.wait [#allocation4], 128  }
 0x296   :  { %532 = vsyncadd [#allocation4], 4294967168 }
 0x297   :  { %533 = dma.done.wait [#allocation10], 128  }
 0x298   :  { %534 = vsyncadd [#allocation10], 4294967168 }
 0x299   :  { %302 = vsyncpa [#allocation3], 1 }
 0x29a   :  { %303 = vsyncpa [#allocation6], 1 }
 0x29b   :  { %304 = vsyncpa [#allocation4], 1 }
 0x29c   :  { %305 = vsyncpa [#allocation10], 1 }

</bundles_post_ra>
